<compile_context>
chip_gen: v5e
topology: v5e:2x2
jax: 0.10.0
libtpu: 0.0.40
codegen_flags: <defaults>
</compile_context>

<pallas_src>
import jax
import jax.numpy as jnp
from jax.experimental import pallas as pl
from jax.experimental.pallas import tpu as pltpu

D_IN, D_H1, D_H2, D_OUT = 4, 512, 256, 2
OUT_PAD = 128      # lane-dense padded output width (true output width is 2)
MAX_TB = 1024      # tile cap: per-step VMEM stays ~6 MB, under v5e's 16 MiB scoped default


def _round_up(x, m):
    return ((x + m - 1) // m) * m


def _choose_tb(B):
    """Adaptive batch-tile size.

    * B <= 256: single tile, rounded up to a 16-row granule (bf16 sublane pack)
      so a batch of 8 is not padded to 256 rows.
    * larger B: 256-aligned (MXU) tiles, capped at MAX_TB, sized ~B/2 when that
      fits so there are >= 2 grid steps for v7x's two TensorCores.
    """
    if B <= 256:
        return max(16, _round_up(B, 16))
    return min(MAX_TB, _round_up(pl.cdiv(B, 2), 256))


def _mlp_kernel(x_ref, w1_ref, b1_ref, w2_ref, b2_ref, w3_ref, b3_ref, o_ref):
    # x tile: (TB, 4) bf16 (cast in the wrapper). Dots: bf16 operands, f32
    # accumulation on the MXU. Bias-add in f32; ReLU fused with the bf16
    # downcast (identical result, halves elementwise width on v6e/v7x).
    h1 = jnp.dot(x_ref[...], w1_ref[...],
                 preferred_element_type=jnp.float32) + b1_ref[...]
    h1 = jnp.maximum(h1, 0.0).astype(jnp.bfloat16)
    h2 = jnp.dot(h1, w2_ref[...],
                 preferred_element_type=jnp.float32) + b2_ref[...]
    h2 = jnp.maximum(h2, 0.0).astype(jnp.bfloat16)
    o = jnp.dot(h2, w3_ref[...],
                preferred_element_type=jnp.float32) + b3_ref[...]
    o_ref[...] = o.astype(o_ref.dtype)      # bf16 store: halves padded writeback


def cartpole_network_forward(x, params):
    """Fused MLP forward. x: (B, 4) float32 -> (B, 2) float32."""
    w1, b1, w2, b2, w3p, b3p = params
    B = x.shape[0]
    TB = _choose_tb(B)
    B_pad = _round_up(B, TB)

    # Cast + pad in the wrapper: halves the x DMA, removes in-kernel repack.
    xb = x.astype(jnp.bfloat16)
    if B_pad != B:
        xb = jnp.pad(xb, ((0, B_pad - B), (0, 0)))

    grid = (B_pad // TB,)
    const = lambda i: (0, 0)

    flops = 2 * B_pad * (D_IN * D_H1 + D_H1 * D_H2 + D_H2 * OUT_PAD)
    bytes_accessed = int(
        B_pad * D_IN * 2                                        # x (bf16)
        + (D_IN * D_H1 + D_H1 * D_H2 + D_H2 * OUT_PAD) * 2      # weights (bf16)
        + (D_H1 + D_H2 + OUT_PAD) * 4                           # biases (f32)
        + B_pad * OUT_PAD * 2)                                  # output (bf16)

    out = pl.pallas_call(
        _mlp_kernel,
        out_shape=jax.ShapeDtypeStruct((B_pad, OUT_PAD), jnp.bfloat16),
        grid=grid,
        in_specs=[
            pl.BlockSpec((TB, D_IN), lambda i: (i, 0)),   # x: tiled over batch
            pl.BlockSpec(w1.shape, const),                # weights/biases VMEM-resident
            pl.BlockSpec(b1.shape, const),
            pl.BlockSpec(w2.shape, const),
            pl.BlockSpec(b2.shape, const),
            pl.BlockSpec(w3p.shape, const),
            pl.BlockSpec(b3p.shape, const),
        ],
        out_specs=pl.BlockSpec((TB, OUT_PAD), lambda i: (i, 0)),
        compiler_params=pltpu.CompilerParams(
            dimension_semantics=("parallel",)),
        cost_estimate=pl.CostEstimate(
            flops=flops, transcendentals=0, bytes_accessed=bytes_accessed),
    )(xb, w1, b1, w2, b2, w3p, b3p)
    return out[:B, :D_OUT].astype(jnp.float32)


def init_params(key):
    """Synthetic parameters matching the PyTorch module shapes.

    PyTorch stores Linear weights as (out, in); here we keep the transposed
    (in, out) layout. Weights are bf16 (MXU operands); biases stay f32 and 2D
    (1, out). Layer 3 is zero-padded to OUT_PAD lanes for a lane-dense store.
    """
    k1, k2, k3, k4, k5, k6 = jax.random.split(key, 6)

    def uniform_init(kw, kb, fan_in, fan_out):
        # Mimic nn.Linear default init: U(-1/sqrt(fan_in), 1/sqrt(fan_in))
        bound = 1.0 / jnp.sqrt(jnp.float32(fan_in))
        w = jax.random.uniform(kw, (fan_in, fan_out), jnp.float32, -bound, bound)
        b = jax.random.uniform(kb, (1, fan_out), jnp.float32, -bound, bound)
        return w, b

    w1, b1 = uniform_init(k1, k2, D_IN, D_H1)
    w2, b2 = uniform_init(k3, k4, D_H1, D_H2)
    w3, b3 = uniform_init(k5, k6, D_H2, D_OUT)

    w3p = jnp.zeros((D_H2, OUT_PAD), jnp.float32).at[:, :D_OUT].set(w3)
    b3p = jnp.zeros((1, OUT_PAD), jnp.float32).at[:, :D_OUT].set(b3)

    return (w1.astype(jnp.bfloat16), b1,
            w2.astype(jnp.bfloat16), b2,
            w3p.astype(jnp.bfloat16), b3p)


def _reference_forward(x, params):
    """Pure-JAX reference computing the same bf16-operand / f32-accum math."""
    w1, b1, w2, b2, w3p, b3p = params
    xb = x.astype(jnp.bfloat16)
    h1 = jnp.maximum(jnp.dot(xb, w1, preferred_element_type=jnp.float32) + b1,
                     0.0).astype(jnp.bfloat16)
    h2 = jnp.maximum(jnp.dot(h1, w2, preferred_element_type=jnp.float32) + b2,
                     0.0).astype(jnp.bfloat16)
    o = jnp.dot(h2, w3p, preferred_element_type=jnp.float32) + b3p
    return o[:, :D_OUT]


if __name__ == "__main__":
    key = jax.random.PRNGKey(0)
    kx, kx2, kp = jax.random.split(key, 3)
    params = init_params(kp)

    # Real CartPole-sized case (observation dim 4, tiny batch).
    batch = 8
    x = jax.random.normal(kx, (batch, D_IN), dtype=jnp.float32)
    out = jax.block_until_ready(cartpole_network_forward(x, params))
    ref = _reference_forward(x, params)
    assert out.shape == (batch, D_OUT)
    assert jnp.allclose(out, ref, atol=2e-2, rtol=2e-2)

    # Moderate batch: exercises multi-step grid, row padding, parallel axis.
    batch2 = 300
    x2 = jax.random.normal(kx2, (batch2, D_IN), dtype=jnp.float32)
    out2 = jax.block_until_ready(cartpole_network_forward(x2, params))
    ref2 = _reference_forward(x2, params)
    assert out2.shape == (batch2, D_OUT)
    assert jnp.allclose(out2, ref2, atol=2e-2, rtol=2e-2)

    print("KERNEL_OK")
</pallas_src>

<mosaic_0001>
module attributes {stable_mosaic.version = 11 : i64} {
  func.func @_mlp_kernel(%arg0: i32, %arg1: memref<16x4xbf16, #tpu.memory_space<vmem>>, %arg2: memref<4x512xbf16, #tpu.memory_space<vmem>>, %arg3: memref<1x512xf32, #tpu.memory_space<vmem>>, %arg4: memref<512x256xbf16, #tpu.memory_space<vmem>>, %arg5: memref<1x256xf32, #tpu.memory_space<vmem>>, %arg6: memref<256x128xbf16, #tpu.memory_space<vmem>>, %arg7: memref<1x128xf32, #tpu.memory_space<vmem>>, %arg8: memref<16x128xbf16, #tpu.memory_space<vmem>>) attributes {dimension_semantics = [#tpu.dimension_semantics<parallel>], iteration_bounds = array<i64: 1>, scalar_prefetch = 0 : i64, scratch_operands = 0 : i64, tpu.core_type = #tpu.core_type<tc>, window_params = [{transform_indices = @transform_0, window_bounds = array<i64: 16, 4>}, {pipeline_mode = #tpu.pipeline_mode<synchronous>, transform_indices = @transform_1, window_bounds = array<i64: 4, 512>}, {pipeline_mode = #tpu.pipeline_mode<synchronous>, transform_indices = @transform_2, window_bounds = array<i64: 1, 512>}, {pipeline_mode = #tpu.pipeline_mode<synchronous>, transform_indices = @transform_3, window_bounds = array<i64: 512, 256>}, {pipeline_mode = #tpu.pipeline_mode<synchronous>, transform_indices = @transform_4, window_bounds = array<i64: 1, 256>}, {pipeline_mode = #tpu.pipeline_mode<synchronous>, transform_indices = @transform_5, window_bounds = array<i64: 256, 128>}, {pipeline_mode = #tpu.pipeline_mode<synchronous>, transform_indices = @transform_6, window_bounds = array<i64: 1, 128>}, {transform_indices = @transform_7, window_bounds = array<i64: 16, 128>}]} {
    %c0 = arith.constant 0 : index
    %c0_0 = arith.constant 0 : index
    %0 = vector.load %arg1[%c0, %c0_0] : memref<16x4xbf16, #tpu.memory_space<vmem>>, vector<16x4xbf16>
    %c0_1 = arith.constant 0 : index
    %c0_2 = arith.constant 0 : index
    %1 = vector.load %arg2[%c0_1, %c0_2] : memref<4x512xbf16, #tpu.memory_space<vmem>>, vector<4x512xbf16>
    %cst = arith.constant dense<0.000000e+00> : vector<16x512xf32>
    %2 = tpu.matmul %0, %1, %cst {dimension_numbers = #tpu.dot_dimension_numbers<[1], [0], [0], [1], [0, 0, 1, 1], [], []>} : vector<16x4xbf16>, vector<4x512xbf16>, vector<16x512xf32> -> vector<16x512xf32>
    %c0_3 = arith.constant 0 : index
    %c0_4 = arith.constant 0 : index
    %3 = vector.load %arg3[%c0_3, %c0_4] : memref<1x512xf32, #tpu.memory_space<vmem>>, vector<1x512xf32>
    %4 = vector.broadcast %3 : vector<1x512xf32> to vector<16x512xf32>
    %5 = arith.addf %2, %4 : vector<16x512xf32>
    %cst_5 = arith.constant 0.000000e+00 : f32
    %6 = vector.broadcast %cst_5 : f32 to vector<16x512xf32>
    %7 = arith.maximumf %5, %6 : vector<16x512xf32>
    %8 = arith.truncf %7 : vector<16x512xf32> to vector<16x512xbf16>
    %c0_6 = arith.constant 0 : index
    %c0_7 = arith.constant 0 : index
    %9 = vector.load %arg4[%c0_6, %c0_7] : memref<512x256xbf16, #tpu.memory_space<vmem>>, vector<512x256xbf16>
    %cst_8 = arith.constant dense<0.000000e+00> : vector<16x256xf32>
    %10 = tpu.matmul %8, %9, %cst_8 {dimension_numbers = #tpu.dot_dimension_numbers<[1], [0], [0], [1], [0, 0, 1, 1], [], []>} : vector<16x512xbf16>, vector<512x256xbf16>, vector<16x256xf32> -> vector<16x256xf32>
    %c0_9 = arith.constant 0 : index
    %c0_10 = arith.constant 0 : index
    %11 = vector.load %arg5[%c0_9, %c0_10] : memref<1x256xf32, #tpu.memory_space<vmem>>, vector<1x256xf32>
    %12 = vector.broadcast %11 : vector<1x256xf32> to vector<16x256xf32>
    %13 = arith.addf %10, %12 : vector<16x256xf32>
    %cst_11 = arith.constant 0.000000e+00 : f32
    %14 = vector.broadcast %cst_11 : f32 to vector<16x256xf32>
    %15 = arith.maximumf %13, %14 : vector<16x256xf32>
    %16 = arith.truncf %15 : vector<16x256xf32> to vector<16x256xbf16>
    %c0_12 = arith.constant 0 : index
    %c0_13 = arith.constant 0 : index
    %17 = vector.load %arg6[%c0_12, %c0_13] : memref<256x128xbf16, #tpu.memory_space<vmem>>, vector<256x128xbf16>
    %cst_14 = arith.constant dense<0.000000e+00> : vector<16x128xf32>
    %18 = tpu.matmul %16, %17, %cst_14 {dimension_numbers = #tpu.dot_dimension_numbers<[1], [0], [0], [1], [0, 0, 1, 1], [], []>} : vector<16x256xbf16>, vector<256x128xbf16>, vector<16x128xf32> -> vector<16x128xf32>
    %c0_15 = arith.constant 0 : index
    %c0_16 = arith.constant 0 : index
    %19 = vector.load %arg7[%c0_15, %c0_16] : memref<1x128xf32, #tpu.memory_space<vmem>>, vector<1x128xf32>
    %20 = vector.broadcast %19 : vector<1x128xf32> to vector<16x128xf32>
    %21 = arith.addf %18, %20 : vector<16x128xf32>
    %22 = arith.truncf %21 : vector<16x128xf32> to vector<16x128xbf16>
    %c0_17 = arith.constant 0 : index
    %c0_18 = arith.constant 0 : index
    %23 = vector.load %arg8[%c0_17, %c0_18] : memref<16x128xbf16, #tpu.memory_space<vmem>>, vector<16x128xbf16>
    tpu.vector_store %arg8[%c0_17, %c0_18], %22 {strides = array<i32>} : memref<16x128xbf16, #tpu.memory_space<vmem>>, vector<16x128xbf16>,
    return
  }
  func.func @transform_0(%arg0: i32) -> (i32, i32) {
    %c0_i32 = arith.constant 0 : i32
    %c0_i32_0 = arith.constant 0 : i32
    return %arg0, %c0_i32 : i32, i32
  }
  func.func @transform_1(%arg0: i32) -> (i32, i32) {
    %c0_i32 = arith.constant 0 : i32
    %c0_i32_0 = arith.constant 0 : i32
    %c0_i32_1 = arith.constant 0 : i32
    return %c0_i32, %c0_i32_0 : i32, i32
  }
  func.func @transform_2(%arg0: i32) -> (i32, i32) {
    %c0_i32 = arith.constant 0 : i32
    %c0_i32_0 = arith.constant 0 : i32
    %c0_i32_1 = arith.constant 0 : i32
    return %c0_i32, %c0_i32_0 : i32, i32
  }
  func.func @transform_3(%arg0: i32) -> (i32, i32) {
    %c0_i32 = arith.constant 0 : i32
    %c0_i32_0 = arith.constant 0 : i32
    %c0_i32_1 = arith.constant 0 : i32
    return %c0_i32, %c0_i32_0 : i32, i32
  }
  func.func @transform_4(%arg0: i32) -> (i32, i32) {
    %c0_i32 = arith.constant 0 : i32
    %c0_i32_0 = arith.constant 0 : i32
    %c0_i32_1 = arith.constant 0 : i32
    return %c0_i32, %c0_i32_0 : i32, i32
  }
  func.func @transform_5(%arg0: i32) -> (i32, i32) {
    %c0_i32 = arith.constant 0 : i32
    %c0_i32_0 = arith.constant 0 : i32
    %c0_i32_1 = arith.constant 0 : i32
    return %c0_i32, %c0_i32_0 : i32, i32
  }
  func.func @transform_6(%arg0: i32) -> (i32, i32) {
    %c0_i32 = arith.constant 0 : i32
    %c0_i32_0 = arith.constant 0 : i32
    %c0_i32_1 = arith.constant 0 : i32
    return %c0_i32, %c0_i32_0 : i32, i32
  }
  func.func @transform_7(%arg0: i32) -> (i32, i32) {
    %c0_i32 = arith.constant 0 : i32
    %c0_i32_0 = arith.constant 0 : i32
    return %arg0, %c0_i32 : i32, i32
  }
}

</mosaic_0001>

<bundles_post_ra>
// kernel: tpu_custom_call.1
= control target key start
LH: loop header
LB: loop body
LE: loop exit
PB: predicated region body
PF: predicated region fallthrough
CT: control target
= control target key end

     0   :  { %12 = vsyncpa [#allocation3], 0  ;;  %s1487_s0 = inlined_call_operand.vmem [shape: bf16[16,4], index: 0, kind: input, shape index: {}]   ;;  %s1488_s1 = inlined_call_operand.vmem [shape: bf16[4,512], index: 1, kind: input, shape index: {}]   ;;  %s1489_s2 = inlined_call_operand.hbm [shape: f32[1,512], index: 2, kind: input, shape index: {}]   ;;  %s1490_s3 = inlined_call_operand.hbm [shape: bf16[512,256], index: 3, kind: input, shape index: {}]   ;;  %s1491_s4 = inlined_call_operand.vmem [shape: f32[1,256], index: 4, kind: input, shape index: {}]   ;;  %s1492_s5 = inlined_call_operand.hbm [shape: bf16[256,128], index: 5, kind: input, shape index: {}]   ;;  %s1493_s6 = inlined_call_operand.vmem [shape: f32[1,128], index: 6, kind: input, shape index: {}]   ;;  %s1494_s7 = inlined_call_operand.hbm [shape: bf16[16,128], index: 7, kind: output, shape index: {}]  }
   0x1   :  { %13 = vsyncpa [#allocation6], 0  ;;  %s34_s26 = sshll.u32 %s1490_s3, 4  ;;  %s35_s26 = int_to_ptr.hbm [resolvable:$true] %s34_s26 }
   0x2   :  { %14 = vsyncpa [#allocation4], 0  ;;  %s1395_s27 = smov [#allocation5]   ;;  %s24_s8 = sshll.u32 %s1489_s2, 4  ;;  %s25_s8 = int_to_ptr.hbm [resolvable:$true] %s24_s8 }
   0x3   :  { %s36_s28 = sshll.u32 %s1395_s27, 4  ;;  %s1396_s9 = smov 128   ;;  %s37_s28 = int_to_ptr.vmem [resolvable:$true] %s36_s28 }
   0x4   :  { %s1397_s10 = smov 8   ;;  %s1398_s11 = smov [#allocation2]  }
   0x5   :  { %42 = dma.hbm_to_vmem [thread:$0]  %s35_s26, 8192, %s37_s28, [#allocation6], %s1396_s9, %s1396_s9, %s1397_s10  }
   0x6   :  { %s26_s12 = sshll.u32 %s1398_s11, 4  ;;  %s49_s15 = sshll.u32 %s1492_s5, 4  ;;  %s27_s12 = int_to_ptr.vmem [resolvable:$true] %s26_s12  ;;  %s50_s15 = int_to_ptr.hbm [resolvable:$true] %s49_s15 }
   0x7   :  { %29 = dma.hbm_to_vmem [thread:$0]  %s25_s8, 64, %s27_s12, [#allocation3]  }
   0x8   :  { %s1399_s3 = smov [#allocation7]   ;;  %s1400_s17 = smov 64  }
   0x9   :  { %s51_s16 = sshll.u32 %s1399_s3, 4  ;;  %s1401_s18 = smov 4   ;;  %s52_s16 = int_to_ptr.vmem [resolvable:$true] %s51_s16 }
   0xa   :  { %57 = dma.hbm_to_vmem [thread:$0]  %s50_s15, 2048, %s52_s16, [#allocation6], %s1400_s17, %s1400_s17, %s1401_s18  }
   0xb   :  { %1389 = dma.done.wait [#allocation3], 64  }
   0xc   :  { %1390 = vsyncadd [#allocation3], 4294967232 }
   0xd   :  { %1391 = dma.done.wait [#allocation6], 10240  }
   0xe   :  { %1392 = vsyncadd [#allocation6], 4294957056  ;;  %v75_v0 = vld [vmem:[%s1488_s1] sm:$0xff]  ;;  %v936_v1 = vld [vmem:[#allocation5 + $0x70] sm:$0xf]  ;;  %vm101_vm0 = vcmask 1041408  }
   0xf   :  { %92 = vst [vmem:[#allocation1] ss:$4 sm:$0xff] %v75_v0  ;;  %v1214_v2 = vld [vmem:[#allocation5 + $0x74] sm:$0xf0]  ;;  %v1000_v3 = vld [vmem:[#allocation5 + $0xf0] sm:$0xf] }
  0x10   :  { %v937_v4 = vor.u32 %v1214_v2, %v936_v1  ;;  %v1230_v5 = vld [vmem:[#allocation5 + $0xf4] sm:$0xf0]  ;;  %v928_v6 = vld [vmem:[#allocation5 + $0x60] sm:$0xf]  ;;  %v1212_v7 = vld [vmem:[#allocation5 + $0x64] sm:$0xf0] }
  0x11   :  { %v1001_v8 = vor.u32 %v1230_v5, %v1000_v3  ;;  %v992_v9 = vld [vmem:[#allocation5 + $0xe0] sm:$0xf]  ;;  %v1228_v10 = vld [vmem:[#allocation5 + $0xe4] sm:$0xf0]  ;;  %v929_v11 = vor.u32 %v1212_v7, %v928_v6  ;;  %v920_v13 = vld [vmem:[#allocation5 + $0x50] sm:$0xf] }
  0x12   :  { %568 = vmatpush.bf16.msra.mxu0 %v937_v4  ;;  %v993_v12 = vor.u32 %v1228_v10, %v992_v9  ;;  %v1210_v14 = vld [vmem:[#allocation5 + $0x54] sm:$0xf0]  ;;  %vm97_vm1 = vcmask 31744   ;;  %v984_v15 = vld [vmem:[#allocation5 + $0xd0] sm:$0xf]  ;;  %s1402_s22 = smov [#allocation8]  }
  0x13   :  { %582 = vmatpush.bf16.msra.mxu1 %v1001_v8  ;;  %v1226_v16 = vld [vmem:[#allocation5 + $0xd4] sm:$0xf0]  ;;  %v912_v17 = vld [vmem:[#allocation5 + $0x40] sm:$0xf]  ;;  %v1208_v18 = vld [vmem:[#allocation5 + $0x44] sm:$0xf0]  ;;  %v921_v22 = vor.u32 %v1210_v14, %v920_v13 }
  0x14   :  { %v1064_v19 = vld [vmem:[#allocation5 + $0x170] sm:$0xf]  ;;  %v1463_v25 = vld [vmem:[%s1487_s0] sm:$0xff]  ;;  %v976_v27 = vld [vmem:[#allocation5 + $0xc0] sm:$0xf]  ;;  %v985_v31 = vor.u32 %v1226_v16, %v984_v15  ;;  %v913_v37 = vor.u32 %v1208_v18, %v912_v17  ;;  %s854_s23 = sshll.u32 %s1402_s22, 4  ;;  %s855_s23 = int_to_ptr.vmem [resolvable:$true] %s854_s23 }
  0x15   :  { %v1224_v28 = vld [vmem:[#allocation5 + $0xc4] sm:$0xf0]  ;;  %v1246_v32 = vld [vmem:[#allocation5 + $0x174] sm:$0xf0]  ;;  %v1128_v35 = vld [vmem:[#allocation5 + $0x1f0] sm:$0xf] }
  0x16   :  { %v93_v20 = vld.sshfl [vmem:[#allocation1] sm:$0xff pattern:$0x73625140]  ;;  %v94_v21 = vld.sshfl [vmem:[#allocation1 + $0x8] sm:$0xff pattern:$0x73625140]  ;;  %569 = vmatpush.bf16.msra.mxu0 %v929_v11  ;;  %v1065_v34 = vor.u32 %v1246_v32, %v1064_v19  ;;  %v977_v43 = vor.u32 %v1224_v28, %v976_v27 }
  0x17   :  { %v102_v23 = vsel %vm101_vm0, %v93_v20, 0  ;;  %v104_v24 = vsel %vm101_vm0, %v94_v21, 0  ;;  %v95_v26 = vld.sshfl [vmem:[#allocation1 + $0x10] sm:$0xff pattern:$0x73625140]  ;;  %583 = vmatpush.bf16.msra.mxu1 %v993_v12  ;;  %s856_s26 = sshll.u32 %s1494_s7, 4  ;;  %s857_s26 = int_to_ptr.hbm [resolvable:$true] %s856_s26 }
  0x18   :  { %117 = vmatpush.bf16.msra.mxu2 %v102_v23  ;;  %131 = vmatpush.bf16.msra.mxu3 %v104_v24  ;;  %v106_v29 = vsel %vm101_vm0, %v95_v26, 0  ;;  %v96_v30 = vld.sshfl [vmem:[#allocation1 + $0x18] sm:$0xff pattern:$0x73625140]  ;;  %v1262_v36 = vld [vmem:[#allocation5 + $0x1f4] sm:$0xf0] }
  0x19   :  { %v108_v33 = vsel %vm101_vm0, %v96_v30, 0  ;;  %v904_v38 = vld [vmem:[#allocation5 + $0x30] sm:$0xf]  ;;  %v1129_v39 = vor.u32 %v1262_v36, %v1128_v35  ;;  %v1206_v40 = vld [vmem:[#allocation5 + $0x34] sm:$0xf0] }
  0x1a   :  { %570 = vmatpush.bf16.msra.mxu0 %v921_v22  ;;  %v1056_v41 = vld [vmem:[#allocation5 + $0x160] sm:$0xf]  ;;  %v1244_v42 = vld [vmem:[#allocation5 + $0x164] sm:$0xf0]  ;;  %v968_v47 = vld [vmem:[#allocation5 + $0xb0] sm:$0xf]  ;;  %v905_v50 = vor.u32 %v1206_v40, %v904_v38 }
  0x1b   :  { %874 = vmatmul.msk.bf16.vlgmr.msra.gmra.mxu2 %vm97_vm1, %v1463_v25  ;;  %875 = vmatmul.msk.bf16.vlgmr.msra.gmra.mxu3 %vm97_vm1, %v1463_v25  ;;  %v1057_v44 = vor.u32 %v1244_v42, %v1056_v41  ;;  %v1120_v45 = vld [vmem:[#allocation5 + $0x1e0] sm:$0xf]  ;;  %v1260_v46 = vld [vmem:[#allocation5 + $0x1e4] sm:$0xf0]  ;;  %v1222_v48 = vld [vmem:[#allocation5 + $0xb4] sm:$0xf0] }
  0x1c   :  { %145 = vmatpush.bf16.msrb.mxu2 %v106_v29  ;;  %159 = vmatpush.bf16.msrb.mxu3 %v108_v33  ;;  %v1121_v49 = vor.u32 %v1260_v46, %v1120_v45  ;;  %v1048_v51 = vld [vmem:[#allocation5 + $0x150] sm:$0xf]  ;;  %v1242_v52 = vld [vmem:[#allocation5 + $0x154] sm:$0xf0]  ;;  %v896_v54 = vld [vmem:[#allocation5 + $0x20] sm:$0xf]  ;;  %v969_v57 = vor.u32 %v1222_v48, %v968_v47 }
  0x1d   :  { %584 = vmatpush.bf16.msra.mxu1 %v985_v31  ;;  %v1112_v53 = vld [vmem:[#allocation5 + $0x1d0] sm:$0xf]  ;;  %v1204_v55 = vld [vmem:[#allocation5 + $0x24] sm:$0xf0]  ;;  %v1258_v56 = vld [vmem:[#allocation5 + $0x1d4] sm:$0xf0]  ;;  %v1049_v59 = vor.u32 %v1242_v52, %v1048_v51 }
  0x1e   :  { %571 = vmatpush.bf16.msra.mxu0 %v913_v37  ;;  %v960_v58 = vld [vmem:[#allocation5 + $0xa0] sm:$0xf]  ;;  %v1220_v60 = vld [vmem:[#allocation5 + $0xa4] sm:$0xf0]  ;;  %v1113_v61 = vor.u32 %v1258_v56, %v1112_v53  ;;  %v897_v0 = vor.u32 %v1204_v55, %v896_v54  ;;  %v888_v3 = vld [vmem:[#allocation5 + $0x10] sm:$0xf] }
  0x1f   :  { %v1040_v62 = vld [vmem:[#allocation5 + $0x140] sm:$0xf]  ;;  %v1240_v63 = vld [vmem:[#allocation5 + $0x144] sm:$0xf0]  ;;  %v1202_v4 = vld [vmem:[#allocation5 + $0x14] sm:$0xf0]  ;;  %v961_v5 = vor.u32 %v1220_v60, %v960_v58 }
  0x20   :  { %596 = vmatpush.bf16.msra.mxu2 %v1065_v34  ;;  %610 = vmatpush.bf16.msra.mxu3 %v1129_v39  ;;  %v1104_v1 = vld [vmem:[#allocation5 + $0x1c0] sm:$0xf]  ;;  %v1256_v2 = vld [vmem:[#allocation5 + $0x1c4] sm:$0xf0]  ;;  %v1041_v6 = vor.u32 %v1240_v63, %v1040_v62  ;;  %v952_v7 = vld [vmem:[#allocation5 + $0x90] sm:$0xf]  ;;  %v889_v10 = vor.u32 %v1202_v4, %v888_v3 }
  0x21   :  { %585 = vmatpush.bf16.msra.mxu1 %v977_v43  ;;  %v1218_v8 = vld [vmem:[#allocation5 + $0x94] sm:$0xf0]  ;;  %v1105_v9 = vor.u32 %v1256_v2, %v1104_v1  ;;  %v880_v11 = vld [vmem:[#allocation5] sm:$0xf]  ;;  %v1200_v12 = vld [vmem:[#allocation5 + $0x4] sm:$0xf0] }
  0x22   :  { %572 = vmatpush.bf16.msra.mxu0 %v905_v50  ;;  %v953_v13 = vor.u32 %v1218_v8, %v952_v7  ;;  %v944_v14 = vld [vmem:[#allocation5 + $0x80] sm:$0xf]  ;;  %v1216_v15 = vld [vmem:[#allocation5 + $0x84] sm:$0xf0]  ;;  %v881_v16 = vor.u32 %v1200_v12, %v880_v11  ;;  %v1213_v18 = vld [vmem:[#allocation5 + $0x74] sm:$0xf] }
  0x23   :  { %v945_v17 = vor.u32 %v1216_v15, %v944_v14  ;;  %v938_v19 = vld [vmem:[#allocation5 + $0x78] sm:$0xf0]  ;;  %v1229_v20 = vld [vmem:[#allocation5 + $0xf4] sm:$0xf]  ;;  %v1032_v24 = vld [vmem:[#allocation5 + $0x130] sm:$0xf] }
  0x24   :  { %597 = vmatpush.bf16.msra.mxu2 %v1057_v44  ;;  %611 = vmatpush.bf16.msra.mxu3 %v1121_v49  ;;  %v941_v21 = vor.u32 %v1213_v18, %v938_v19  ;;  %v1002_v22 = vld [vmem:[#allocation5 + $0xf8] sm:$0xf0]  ;;  %v1238_v26 = vld [vmem:[#allocation5 + $0x134] sm:$0xf0]  ;;  %v1096_v27 = vld [vmem:[#allocation5 + $0x1b0] sm:$0xf] }
  0x25   :  { %586 = vmatpush.bf16.msra.mxu1 %v969_v57  ;;  %v1005_v23 = vor.u32 %v1229_v20, %v1002_v22  ;;  %v1033_v28 = vor.u32 %v1238_v26, %v1032_v24  ;;  %v1254_v29 = vld [vmem:[#allocation5 + $0x1b4] sm:$0xf0]  ;;  %v1211_v30 = vld [vmem:[#allocation5 + $0x64] sm:$0xf]  ;;  %v994_v33 = vld [vmem:[#allocation5 + $0xe8] sm:$0xf0] }
  0x26   :  { %573 = vmatpush.bf16.msra.mxu0 %v897_v0  ;;  %v1097_v31 = vor.u32 %v1254_v29, %v1096_v27  ;;  %v1227_v32 = vld [vmem:[#allocation5 + $0xe4] sm:$0xf]  ;;  %v1024_v36 = vld [vmem:[#allocation5 + $0x120] sm:$0xf]  ;;  %v1236_v37 = vld [vmem:[#allocation5 + $0x124] sm:$0xf0] }
  0x27   :  { %v997_v35 = vor.u32 %v1227_v32, %v994_v33  ;;  %v1088_v38 = vld [vmem:[#allocation5 + $0x1a0] sm:$0xf]  ;;  %v1025_v39 = vor.u32 %v1236_v37, %v1024_v36  ;;  %v1252_v40 = vld [vmem:[#allocation5 + $0x1a4] sm:$0xf0]  ;;  %v1209_v42 = vld [vmem:[#allocation5 + $0x54] sm:$0xf] }
  0x28   :  { %598 = vmatpush.bf16.msra.mxu2 %v1049_v59  ;;  %612 = vmatpush.bf16.msra.mxu3 %v1113_v61  ;;  %v1089_v41 = vor.u32 %v1252_v40, %v1088_v38  ;;  %v922_v43 = vld [vmem:[#allocation5 + $0x58] sm:$0xf0]  ;;  %v1225_v44 = vld [vmem:[#allocation5 + $0xd4] sm:$0xf]  ;;  %v1016_v48 = vld [vmem:[#allocation5 + $0x110] sm:$0xf] }
  0x29   :  { %587 = vmatpush.bf16.msra.mxu1 %v961_v5  ;;  %v925_v45 = vor.u32 %v1209_v42, %v922_v43  ;;  %v986_v46 = vld [vmem:[#allocation5 + $0xd8] sm:$0xf0]  ;;  %v1234_v49 = vld [vmem:[#allocation5 + $0x114] sm:$0xf0]  ;;  %v1080_v50 = vld [vmem:[#allocation5 + $0x190] sm:$0xf] }
  0x2a   :  { %574 = vmatpush.bf16.msra.mxu0 %v889_v10  ;;  %v989_v47 = vor.u32 %v1225_v44, %v986_v46  ;;  %v1017_v51 = vor.u32 %v1234_v49, %v1016_v48  ;;  %v1250_v52 = vld [vmem:[#allocation5 + $0x194] sm:$0xf0]  ;;  %v1207_v53 = vld [vmem:[#allocation5 + $0x44] sm:$0xf]  ;;  %v914_v54 = vld [vmem:[#allocation5 + $0x48] sm:$0xf0] }
  0x2b   :  { %876 = vmatmul.msk.bf16.vlgmr.msrb.gmra.mxu2 %vm97_vm1, %v1463_v25  ;;  %877 = vmatmul.msk.bf16.vlgmr.msrb.gmra.mxu3 %vm97_vm1, %v1463_v25  ;;  %v930_v25 = vld [vmem:[#allocation5 + $0x68] sm:$0xf0]  ;;  %v1081_v55 = vor.u32 %v1250_v52, %v1080_v50  ;;  %v917_v56 = vor.u32 %v1207_v53, %v914_v54  ;;  %v1223_v57 = vld [vmem:[#allocation5 + $0xc4] sm:$0xf]  ;;  %v1008_v60 = vld [vmem:[#allocation5 + $0x100] sm:$0xf] }
  0x2c   :  { %599 = vmatpush.bf16.msra.mxu2 %v1041_v6  ;;  %613 = vmatpush.bf16.msra.mxu3 %v1105_v9  ;;  %v933_v34 = vor.u32 %v1211_v30, %v930_v25  ;;  %v978_v58 = vld [vmem:[#allocation5 + $0xc8] sm:$0xf0]  ;;  %v1232_v61 = vld [vmem:[#allocation5 + $0x104] sm:$0xf0]  ;;  %v1072_v62 = vld [vmem:[#allocation5 + $0x180] sm:$0xf] }
  0x2d   :  { %588 = vmatpush.bf16.msra.mxu1 %v953_v13  ;;  %v981_v59 = vor.u32 %v1223_v57, %v978_v58  ;;  %v1009_v63 = vor.u32 %v1232_v61, %v1008_v60  ;;  %v1248_v0 = vld [vmem:[#allocation5 + $0x184] sm:$0xf0]  ;;  %v1205_v1 = vld [vmem:[#allocation5 + $0x34] sm:$0xf]  ;;  %v906_v2 = vld [vmem:[#allocation5 + $0x38] sm:$0xf0] }
  0x2e   :  { %575 = vmatpush.bf16.msra.mxu0 %v881_v16  ;;  %v1073_v3 = vor.u32 %v1248_v0, %v1072_v62  ;;  %v909_v4 = vor.u32 %v1205_v1, %v906_v2  ;;  %v1221_v5 = vld [vmem:[#allocation5 + $0xb4] sm:$0xf]  ;;  %v970_v6 = vld [vmem:[#allocation5 + $0xb8] sm:$0xf0]  ;;  %v1203_v14 = vld [vmem:[#allocation5 + $0x24] sm:$0xf] }
  0x2f   :  { %v1245_v7 = vld [vmem:[#allocation5 + $0x174] sm:$0xf]  ;;  %v973_v8 = vor.u32 %v1221_v5, %v970_v6  ;;  %v1066_v9 = vld [vmem:[#allocation5 + $0x178] sm:$0xf0]  ;;  %v898_v15 = vld [vmem:[#allocation5 + $0x28] sm:$0xf0] }
  0x30   :  { %600 = vmatpush.bf16.msra.mxu2 %v1033_v28  ;;  %614 = vmatpush.bf16.msra.mxu3 %v1097_v31  ;;  %v1261_v10 = vld [vmem:[#allocation5 + $0x1f4] sm:$0xf]  ;;  %v1069_v11 = vor.u32 %v1245_v7, %v1066_v9  ;;  %v1130_v12 = vld [vmem:[#allocation5 + $0x1f8] sm:$0xf0]  ;;  %v901_v16 = vor.u32 %v1203_v14, %v898_v15  ;;  %v962_v18 = vld [vmem:[#allocation5 + $0xa8] sm:$0xf0] }
  0x31   :  { %589 = vmatpush.bf16.msra.mxu1 %v945_v17  ;;  %v1133_v13 = vor.u32 %v1261_v10, %v1130_v12  ;;  %v1219_v17 = vld [vmem:[#allocation5 + $0xa4] sm:$0xf]  ;;  %v1201_v27 = vld [vmem:[#allocation5 + $0x14] sm:$0xf]  ;;  %v890_v28 = vld [vmem:[#allocation5 + $0x18] sm:$0xf0] }
  0x32   :  { %624 = vmatpush.bf16.msrb.mxu0 %v941_v21  ;;  %v1243_v19 = vld [vmem:[#allocation5 + $0x164] sm:$0xf]  ;;  %v965_v20 = vor.u32 %v1219_v17, %v962_v18  ;;  %v1058_v21 = vld [vmem:[#allocation5 + $0x168] sm:$0xf0]  ;;  %v1217_v29 = vld [vmem:[#allocation5 + $0x94] sm:$0xf]  ;;  %v893_v30 = vor.u32 %v1201_v27, %v890_v28 }
  0x33   :  { %v1259_v22 = vld [vmem:[#allocation5 + $0x1e4] sm:$0xf]  ;;  %v1061_v24 = vor.u32 %v1243_v19, %v1058_v21  ;;  %v954_v31 = vld [vmem:[#allocation5 + $0x98] sm:$0xf0]  ;;  %v1241_v25 = vld [vmem:[#allocation5 + $0x154] sm:$0xf] }
  0x34   :  { %601 = vmatpush.bf16.msra.mxu2 %v1025_v39  ;;  %615 = vmatpush.bf16.msra.mxu3 %v1089_v41  ;;  %v1050_v32 = vld [vmem:[#allocation5 + $0x158] sm:$0xf0]  ;;  %v957_v33 = vor.u32 %v1217_v29, %v954_v31  ;;  %v1199_v38 = vld [vmem:[#allocation5 + $0x4] sm:$0xf]  ;;  %v882_v39 = vld [vmem:[#allocation5 + $0x8] sm:$0xf0] }
  0x35   :  { %638 = vmatpush.bf16.msrb.mxu1 %v1005_v23  ;;  %v1122_v23 = vld [vmem:[#allocation5 + $0x1e8] sm:$0xf0]  ;;  %v1114_v36 = vld [vmem:[#allocation5 + $0x1d8] sm:$0xf0]  ;;  %v1215_v40 = vld [vmem:[#allocation5 + $0x84] sm:$0xf]  ;;  %v885_v41 = vor.u32 %v1199_v38, %v882_v39 }
  0x36   :  { %625 = vmatpush.bf16.msrb.mxu0 %v933_v34  ;;  %v1125_v26 = vor.u32 %v1259_v22, %v1122_v23  ;;  %v1053_v34 = vor.u32 %v1241_v25, %v1050_v32  ;;  %v946_v42 = vld [vmem:[#allocation5 + $0x88] sm:$0xf0]  ;;  %v1239_v43 = vld [vmem:[#allocation5 + $0x144] sm:$0xf]  ;;  %v1237_v50 = vld [vmem:[#allocation5 + $0x134] sm:$0xf] }
  0x37   :  { %v1042_v44 = vld [vmem:[#allocation5 + $0x148] sm:$0xf0]  ;;  %v1253_v52 = vld [vmem:[#allocation5 + $0x1b4] sm:$0xf]  ;;  %v76_v53 = vld [vmem:[#allocation2] sm:$0xf] }
  0x38   :  { %602 = vmatpush.bf16.msra.mxu2 %v1017_v51  ;;  %616 = vmatpush.bf16.msra.mxu3 %v1081_v55  ;;  %v1045_v46 = vor.u32 %v1239_v43, %v1042_v44  ;;  %v1106_v48 = vld [vmem:[#allocation5 + $0x1c8] sm:$0xf0]  ;;  %v1034_v51 = vld [vmem:[#allocation5 + $0x138] sm:$0xf0]  ;;  %v1251_v61 = vld [vmem:[#allocation5 + $0x1a4] sm:$0xf] }
  0x39   :  { %639 = vmatpush.bf16.msrb.mxu1 %v997_v35  ;;  %v1257_v35 = vld [vmem:[#allocation5 + $0x1d4] sm:$0xf]  ;;  %v1037_v54 = vor.u32 %v1237_v50, %v1034_v51  ;;  %v1098_v55 = vld [vmem:[#allocation5 + $0x1b8] sm:$0xf0]  ;;  %v1026_v60 = vld [vmem:[#allocation5 + $0x128] sm:$0xf0] }
  0x3a   :  { %626 = vmatpush.bf16.msrb.mxu0 %v925_v45  ;;  %v1117_v37 = vor.u32 %v1257_v35, %v1114_v36  ;;  %v949_v45 = vor.u32 %v1215_v40, %v946_v42  ;;  %v1101_v58 = vor.u32 %v1253_v52, %v1098_v55  ;;  %v1090_v62 = vld [vmem:[#allocation5 + $0x1a8] sm:$0xf0]  ;;  %v78_v0 = vperm.slane %v76_v53, 0  ;;  %v1249_v5 = vld [vmem:[#allocation5 + $0x194] sm:$0xf]  ;;  %v1270_v43 = vld [vmem:[#allocation7 + $0x38] sm:$0xff] }
  0x3b   :  { %v79_v1 = vperm.slane %v76_v53, 1  ;;  %v1093_v2 = vor.u32 %v1251_v61, %v1090_v62  ;;  %v1082_v6 = vld [vmem:[#allocation5 + $0x198] sm:$0xf0]  ;;  %v1010_v12 = vld [vmem:[#allocation5 + $0x108] sm:$0xf0]  ;;  %v81_v31 = vperm.slane %v76_v53, 3 }
  0x3c   :  { %603 = vmatpush.bf16.msra.mxu2 %v1009_v63  ;;  %617 = vmatpush.bf16.msra.mxu3 %v1073_v3  ;;  %v1233_v3 = vld [vmem:[#allocation5 + $0x114] sm:$0xf]  ;;  %v1085_v10 = vor.u32 %v1249_v5, %v1082_v6  ;;  %v1247_v17 = vld [vmem:[#allocation5 + $0x184] sm:$0xf]  ;;  %v1074_v18 = vld [vmem:[#allocation5 + $0x188] sm:$0xf0] }
  0x3d   :  { %640 = vmatpush.bf16.msrb.mxu1 %v989_v47  ;;  %v1255_v47 = vld [vmem:[#allocation5 + $0x1c4] sm:$0xf]  ;;  %v1269_v44 = vld [vmem:[#allocation7 + $0x30] sm:$0xff]  ;;  %v1264_v51 = vld [vmem:[#allocation7 + $0x8] sm:$0xff] }
  0x3e   :  { %627 = vmatpush.bf16.msrb.mxu0 %v917_v56  ;;  %v1109_v49 = vor.u32 %v1255_v47, %v1106_v48  ;;  %v1266_v47 = vld [vmem:[#allocation7 + $0x18] sm:$0xff]  ;;  %v1277_v50 = vld [vmem:[#allocation7 + $0x70] sm:$0xff]  ;;  %v1276_v52 = vld [vmem:[#allocation7 + $0x68] sm:$0xff] }
  0x3f   :  { %v1278_v48 = vld [vmem:[#allocation7 + $0x78] sm:$0xff] }
  0x40   :  { %652 = vmatpush.bf16.msrb.mxu2 %v1069_v11  ;;  %666 = vmatpush.bf16.msrb.mxu3 %v1133_v13  ;;  %v1231_v11 = vld [vmem:[#allocation5 + $0x104] sm:$0xf] }
  0x41   :  { %641 = vmatpush.bf16.msrb.mxu1 %v981_v59  ;;  %v1235_v59 = vld [vmem:[#allocation5 + $0x124] sm:$0xf]  ;;  %v1013_v19 = vor.u32 %v1231_v11, %v1010_v12 }
  0x42   :  { %628 = vmatpush.bf16.msrb.mxu0 %v909_v4  ;;  %v1029_v63 = vor.u32 %v1235_v59, %v1026_v60  ;;  %v1018_v4 = vld [vmem:[#allocation5 + $0x118] sm:$0xf0]  ;;  %v1272_v60 = vld [vmem:[#allocation7 + $0x48] sm:$0xff] }
  0x43   :  { %v1021_v7 = vor.u32 %v1233_v3, %v1018_v4 }
  0x44   :  { %653 = vmatpush.bf16.msrb.mxu2 %v1061_v24  ;;  %667 = vmatpush.bf16.msrb.mxu3 %v1125_v26  ;;  %v1077_v24 = vor.u32 %v1247_v17, %v1074_v18 }
  0x45   :  { %642 = vmatpush.bf16.msrb.mxu1 %v973_v8 }
  0x46   :  { %629 = vmatpush.bf16.msrb.mxu0 %v901_v16 }
  0x48   :  { %654 = vmatpush.bf16.msrb.mxu2 %v1053_v34  ;;  %668 = vmatpush.bf16.msrb.mxu3 %v1117_v37 }
  0x49   :  { %643 = vmatpush.bf16.msrb.mxu1 %v965_v20 }
  0x4a   :  { %630 = vmatpush.bf16.msrb.mxu0 %v893_v30  ;;  %v80_v30 = vperm.slane %v76_v53, 2  ;;  %v1263_v53 = vld [vmem:[#allocation7] sm:$0xff] }
  0x4c   :  { %655 = vmatpush.bf16.msrb.mxu2 %v1045_v46  ;;  %669 = vmatpush.bf16.msrb.mxu3 %v1109_v49  ;;  %v1267_v46 = vld [vmem:[#allocation7 + $0x20] sm:$0xff]  ;;  %v1265_v49 = vld [vmem:[#allocation7 + $0x10] sm:$0xff] }
  0x4d   :  { %644 = vmatpush.bf16.msrb.mxu1 %v957_v33 }
  0x4e   :  { %631 = vmatpush.bf16.msrb.mxu0 %v885_v41 }
  0x50   :  { %656 = vmatpush.bf16.msrb.mxu2 %v1037_v54  ;;  %670 = vmatpush.bf16.msrb.mxu3 %v1101_v58  ;;  %v1275_v54 = vld [vmem:[#allocation7 + $0x60] sm:$0xff]  ;;  %v242_v58 = vld [vmem:[%s1491_s4] sm:$0x3] }
  0x51   :  { %645 = vmatpush.bf16.msrb.mxu1 %v949_v45  ;;  %v1268_v45 = vld [vmem:[#allocation7 + $0x28] sm:$0xff]  ;;  %v244_v61 = vperm.slane %v242_v58, 0 }
  0x54   :  { %657 = vmatpush.bf16.msrb.mxu2 %v1029_v63  ;;  %671 = vmatpush.bf16.msrb.mxu3 %v1093_v2  ;;  %v1271_v63 = vld [vmem:[#allocation7 + $0x40] sm:$0xff] }
  0x58   :  { %658 = vmatpush.bf16.msrb.mxu2 %v1021_v7  ;;  %672 = vmatpush.bf16.msrb.mxu3 %v1085_v10 }
  0x5c   :  { %659 = vmatpush.bf16.msrb.mxu2 %v1013_v19  ;;  %673 = vmatpush.bf16.msrb.mxu3 %v1077_v24 }
  0x9e   :  { %v119_v56 = vpop.f32.mrf.mxu2  ;;  %v133_v57 = vpop.f32.mrf.mxu3 }
  0x9f   :  { %v120_v8 = vadd.f32 %v119_v56, %v78_v0  ;;  %v134_v9 = vadd.f32 %v133_v57, %v79_v1  ;;  %v1274_v56 = vld [vmem:[#allocation7 + $0x58] sm:$0xff]  ;;  %v1273_v57 = vld [vmem:[#allocation7 + $0x50] sm:$0xff] }
  0xa1   :  { %v166_v20 = vmax.f32 %v120_v8, 0.0  ;;  %v167_v21 = vmax.f32 %v134_v9, 0.0 }
  0xa6   :  { %v121_v13 = vpop.f32.mrf.mxu2  ;;  %v135_v14 = vpop.f32.mrf.mxu3 }
  0xa7   :  { %v122_v15 = vadd.f32 %v121_v13, %v78_v0  ;;  %v136_v16 = vadd.f32 %v135_v14, %v79_v1  ;;  %v245_v13 = vperm.slane %v242_v58, 1 }
  0xa9   :  { %v170_v22 = vmax.f32 %v122_v15, 0.0  ;;  %v171_v23 = vmax.f32 %v136_v16, 0.0 }
  0xab   :  { %v174_v26 = vpack.c.bf16 %v170_v22, %v166_v20  ;;  %v175_v27 = vpack.c.bf16 %v171_v23, %v167_v21 }
  0xad   :  { %576 = vmatmul.bf16.vlgmr.msra.gmra.mxu0 %v174_v26  ;;  %590 = vmatmul.bf16.vlgmr.msra.gmra.mxu1 %v175_v27 }
  0xae   :  { %v147_v28 = vpop.f32.mrf.mxu2  ;;  %v161_v29 = vpop.f32.mrf.mxu3  ;;  %818 = vmatpush.bf16.msra.mxu0 %v1270_v43  ;;  %832 = vmatpush.bf16.msra.mxu1 %v1278_v48 }
  0xaf   :  { %v148_v25 = vadd.f32 %v147_v28, %v80_v30  ;;  %v162_v32 = vadd.f32 %v161_v29, %v81_v31 }
  0xb1   :  { %v168_v37 = vmax.f32 %v148_v25, 0.0  ;;  %v169_v38 = vmax.f32 %v162_v32, 0.0 }
  0xb2   :  { %819 = vmatpush.bf16.msra.mxu0 %v1269_v44  ;;  %833 = vmatpush.bf16.msra.mxu1 %v1277_v50 }
  0xb6   :  { %v149_v33 = vpop.f32.mrf.mxu2  ;;  %v163_v34 = vpop.f32.mrf.mxu3  ;;  %820 = vmatpush.bf16.msra.mxu0 %v1268_v45  ;;  %834 = vmatpush.bf16.msra.mxu1 %v1276_v52 }
  0xb7   :  { %v150_v35 = vadd.f32 %v149_v33, %v80_v30  ;;  %v164_v36 = vadd.f32 %v163_v34, %v81_v31 }
  0xb9   :  { %v172_v39 = vmax.f32 %v150_v35, 0.0  ;;  %v173_v40 = vmax.f32 %v164_v36, 0.0 }
  0xba   :  { %821 = vmatpush.bf16.msra.mxu0 %v1267_v46  ;;  %835 = vmatpush.bf16.msra.mxu1 %v1275_v54 }
  0xbb   :  { %v176_v41 = vpack.c.bf16 %v172_v39, %v168_v37  ;;  %v177_v42 = vpack.c.bf16 %v173_v40, %v169_v38  ;;  %v1292_v38 = vld [vmem:[%s1493_s6] ss:$0 sm:$0xff] }
  0xbd   :  { %604 = vmatmul.bf16.vlgmr.msra.gmra.mxu2 %v176_v41  ;;  %618 = vmatmul.bf16.vlgmr.msra.gmra.mxu3 %v177_v42 }
  0xbe   :  { %632 = vmatmul.bf16.vlgmr.msrb.gmra.mxu0 %v174_v26  ;;  %646 = vmatmul.bf16.vlgmr.msrb.gmra.mxu1 %v175_v27 }
  0xbf   :  { %822 = vmatpush.bf16.msra.mxu0 %v1266_v47  ;;  %836 = vmatpush.bf16.msra.mxu1 %v1274_v56 }
  0xc3   :  { %823 = vmatpush.bf16.msra.mxu0 %v1265_v49  ;;  %837 = vmatpush.bf16.msra.mxu1 %v1273_v57 }
  0xc7   :  { %824 = vmatpush.bf16.msra.mxu0 %v1264_v51  ;;  %838 = vmatpush.bf16.msra.mxu1 %v1272_v60 }
  0xcb   :  { %825 = vmatpush.bf16.msra.mxu0 %v1263_v53  ;;  %839 = vmatpush.bf16.msra.mxu1 %v1271_v63 }
  0xcd   :  { %660 = vmatmul.bf16.vlgmr.msrb.gmra.mxu2 %v176_v41  ;;  %674 = vmatmul.bf16.vlgmr.msrb.gmra.mxu3 %v177_v42 }
 0x12a   :  { %v577_v55 = vpop.f32.mrf.mxu0  ;;  %v591_v59 = vpop.f32.mrf.mxu1 }
 0x12b   :  { %v578_v0 = vadd.f32 %v577_v55, %v244_v61 }
 0x12d   :  { %v592_v4 = vadd.f32 %v591_v59, %v578_v0 }
 0x132   :  { %v579_v62 = vpop.f32.mrf.mxu0  ;;  %v593_v3 = vpop.f32.mrf.mxu1 }
 0x133   :  { %v580_v5 = vadd.f32 %v579_v62, %v244_v61 }
 0x135   :  { %v594_v8 = vadd.f32 %v593_v3, %v580_v5 }
 0x13b   :  { %v633_v6 = vpop.f32.mrf.mxu0  ;;  %v647_v15 = vpop.f32.mrf.mxu1 }
 0x13c   :  { %v634_v18 = vadd.f32 %v633_v6, %v245_v13 }
 0x13e   :  { %v648_v23 = vadd.f32 %v647_v15, %v634_v18 }
 0x140   :  { %v605_v1 = vpop.f32.mrf.mxu2  ;;  %v619_v2 = vpop.f32.mrf.mxu3 }
 0x141   :  { %v606_v7 = vadd.f32 %v605_v1, %v592_v4 }
 0x143   :  { %v620_v11 = vadd.f32 %v619_v2, %v606_v7  ;;  %v635_v19 = vpop.f32.mrf.mxu0  ;;  %v649_v27 = vpop.f32.mrf.mxu1 }
 0x144   :  { %v636_v24 = vadd.f32 %v635_v19, %v245_v13 }
 0x145   :  { %v680_v16 = vmax.f32 %v620_v11, 0.0 }
 0x146   :  { %v650_v28 = vadd.f32 %v649_v27, %v636_v24 }
 0x148   :  { %v607_v9 = vpop.f32.mrf.mxu2  ;;  %v621_v10 = vpop.f32.mrf.mxu3 }
 0x149   :  { %v608_v12 = vadd.f32 %v607_v9, %v594_v8 }
 0x14b   :  { %v622_v14 = vadd.f32 %v621_v10, %v608_v12 }
 0x14d   :  { %v682_v17 = vmax.f32 %v622_v14, 0.0 }
 0x14f   :  { %v684_v20 = vpack.c.bf16 %v682_v17, %v680_v16 }
 0x150   :  { %v661_v21 = vpop.f32.mrf.mxu2  ;;  %v675_v22 = vpop.f32.mrf.mxu3 }
 0x151   :  { %826 = vmatmul.bf16.vlgmr.msra.gmra.mxu0 %v684_v20  ;;  %v662_v26 = vadd.f32 %v661_v21, %v648_v23 }
 0x153   :  { %v676_v30 = vadd.f32 %v675_v22, %v662_v26 }
 0x155   :  { %v681_v33 = vmax.f32 %v676_v30, 0.0 }
 0x158   :  { %v663_v29 = vpop.f32.mrf.mxu2  ;;  %v677_v25 = vpop.f32.mrf.mxu3 }
 0x159   :  { %v664_v31 = vadd.f32 %v663_v29, %v650_v28 }
 0x15b   :  { %v678_v32 = vadd.f32 %v677_v25, %v664_v31 }
 0x15d   :  { %v683_v34 = vmax.f32 %v678_v32, 0.0 }
 0x15f   :  { %v685_v35 = vpack.c.bf16 %v683_v34, %v681_v33 }
 0x161   :  { %840 = vmatmul.bf16.vlgmr.msra.gmra.mxu1 %v685_v35 }
 0x1ce   :  { %v827_v36 = vpop.f32.mrf.mxu0 }
 0x1cf   :  { %v828_v40 = vadd.f32 %v1292_v38, %v827_v36 }
 0x1d6   :  { %v829_v39 = vpop.f32.mrf.mxu0 }
 0x1d7   :  { %v830_v41 = vadd.f32 %v1292_v38, %v829_v39 }
 0x1de   :  { %v841_v37 = vpop.f32.mrf.mxu1 }
 0x1df   :  { %v842_v43 = vadd.f32 %v841_v37, %v828_v40 }
 0x1e6   :  { %v843_v42 = vpop.f32.mrf.mxu1 }
 0x1e7   :  { %v844_v44 = vadd.f32 %v843_v42, %v830_v41 }
 0x1e9   :  { %v1282_v45 = vpack.c.bf16 %v844_v44, %v842_v43 }
 0x1eb   :  { %1283 = vst [vmem:[#allocation8] sm:$0xff] %v1282_v45  }
 0x1ec   :  { %862 = dma.vmem_to_hbm [thread:$0]  %s855_s23, 128, %s857_s26, [#allocation4], %s1400_s17, %s1400_s17, %s1401_s18  }
 0x1ed   :  { %1393 = dma.done.wait [#allocation4], 128  }
 0x1ee   :  { %1394 = vsyncadd [#allocation4], 4294967168 }
 0x1ef   :  { %867 = vsyncpa [#allocation3], 1 }
 0x1f0   :  { %868 = vsyncpa [#allocation6], 1 }
 0x1f1   :  { %869 = vsyncpa [#allocation4], 1 }

</bundles_post_ra>
